<compile_context>
chip_gen: v5e
topology: v5e:2x2
jax: 0.10.0
libtpu: 0.0.40
codegen_flags: <defaults>
</compile_context>

<pallas_src>
import functools

import jax
import jax.numpy as jnp
from jax import lax
from jax.experimental import pallas as pl
from jax.experimental.pallas import tpu as pltpu


# ----------------------------------------------------------------------------- utils
def _round_up(x, m):
    return (x + m - 1) // m * m


def _pick_tile(dim, prefs=(512, 256, 128)):
    for t in prefs:
        if dim % t == 0:
            return t
    return dim


def _tile_rows(M):
    """Choose (tile_m, padded_M) with tile_m | padded_M; keeps VMEM input-size independent."""
    if M <= 256:
        Mp = _round_up(M, 8)
        return Mp, Mp
    Mp = _round_up(M, 256)
    tm = 512 if Mp % 512 == 0 else 256
    return tm, Mp


def _pad_to(x, shape, value=0.0):
    pads = [(0, t - s) for s, t in zip(x.shape, shape)]
    if all(p == (0, 0) for p in pads):
        return x
    return jnp.pad(x, pads, constant_values=value)


def _bn_rows(vec, n_pad):
    v = jnp.broadcast_to(vec.astype(jnp.float32)[None, :], (8, vec.shape[0]))
    return _pad_to(v, (8, n_pad))


# ------------------------------------------------ fused matmul + BN (+residual) (+ReLU)
def _mm_kernel(a_ref, b_ref, s_ref, c_ref, o_ref, *, relu):
    k = pl.program_id(2)

    @pl.when(k == 0)
    def _():
        o_ref[...] = jnp.zeros_like(o_ref)

    o_ref[...] += jnp.dot(a_ref[...], b_ref[...], preferred_element_type=jnp.float32)

    @pl.when(k == pl.num_programs(2) - 1)
    def _():
        y = o_ref[...] * s_ref[0:1, :] + c_ref[0:1, :]
        if relu:
            y = jnp.maximum(y, 0.0)
        o_ref[...] = y


def _mm_res_kernel(a_ref, b_ref, s_ref, c_ref, r_ref, o_ref, *, relu):
    k = pl.program_id(2)

    @pl.when(k == 0)
    def _():
        o_ref[...] = jnp.zeros_like(o_ref)

    o_ref[...] += jnp.dot(a_ref[...], b_ref[...], preferred_element_type=jnp.float32)

    @pl.when(k == pl.num_programs(2) - 1)
    def _():
        y = o_ref[...] * s_ref[0:1, :] + c_ref[0:1, :] + r_ref[...]
        if relu:
            y = jnp.maximum(y, 0.0)
        o_ref[...] = y


def matmul_scale_bias(a, b, scale, bias, relu=False, residual=None):
    """y = relu_opt((a @ b) * scale + bias [+ residual]).

    a:(M,K), b:(K,N) cast to bf16 (f32 MXU accumulation); scale/bias/residual stay f32.
    """
    M, K = a.shape
    K2, N = b.shape
    assert K == K2
    Kp, Np = _round_up(K, 128), _round_up(N, 128)
    tm, Mp = _tile_rows(M)
    tk = _pick_tile(Kp)
    tn = _pick_tile(Np)

    a_p = _pad_to(a.astype(jnp.bfloat16), (Mp, Kp))
    b_p = _pad_to(b.astype(jnp.bfloat16), (Kp, Np))
    s_p = _bn_rows(scale, Np)
    c_p = _bn_rows(bias, Np)

    in_specs = [
        pl.BlockSpec((tm, tk), lambda i, j, k: (i, k)),
        pl.BlockSpec((tk, tn), lambda i, j, k: (k, j)),
        pl.BlockSpec((8, tn), lambda i, j, k: (0, j)),
        pl.BlockSpec((8, tn), lambda i, j, k: (0, j)),
    ]
    args = [a_p, b_p, s_p, c_p]
    if residual is None:
        kernel = functools.partial(_mm_kernel, relu=relu)
    else:
        in_specs.append(pl.BlockSpec((tm, tn), lambda i, j, k: (i, j)))
        args.append(_pad_to(residual.astype(jnp.float32), (Mp, Np)))
        kernel = functools.partial(_mm_res_kernel, relu=relu)

    out = pl.pallas_call(
        kernel,
        out_shape=jax.ShapeDtypeStruct((Mp, Np), jnp.float32),
        grid_spec=pltpu.PrefetchScalarGridSpec(
            num_scalar_prefetch=0,
            grid=(Mp // tm, Np // tn, Kp // tk),
            in_specs=in_specs,
            out_specs=pl.BlockSpec((tm, tn), lambda i, j, k: (i, j)),
        ),
        compiler_params=pltpu.CompilerParams(
            dimension_semantics=("parallel", "parallel", "arbitrary")),
    )(*args)
    return out[:M, :N]


# ------------------------------------------------ 3x3 / stride-1 conv without im2col
def _conv3x3_s1_kernel(x_ref, w_ref, s_ref, c_ref, o_ref, *, C, Wp, Mo, relu):
    # x_ref: (P, C) bf16 -- one padded image, padded pixels flattened row-major.
    # w_ref: (9*C, tn) bf16 (tap-major).  o_ref: (Mo, tn) f32, Mo = H * Wp.
    x_full = x_ref[...]
    w_full = w_ref[...]
    acc = jnp.zeros(o_ref.shape, jnp.float32)
    for t in range(9):
        di, dj = t // 3, t % 3
        off = di * Wp + dj
        a = x_full[off:off + Mo, :]                 # contiguous row window per tap
        wt = w_full[t * C:(t + 1) * C, :]
        acc = acc + jnp.dot(a, wt, preferred_element_type=jnp.float32)
    y = acc * s_ref[0:1, :] + c_ref[0:1, :]
    if relu:
        y = jnp.maximum(y, 0.0)
    o_ref[...] = y


def conv3x3_s1_bn(x, w, bn, relu=True):
    """3x3 / stride-1 / pad-1 conv + BN (+ReLU) with the 9 taps accumulated in-kernel.

    The input is padded by (1,2) on H and W and flattened so that every tap of the
    3x3 kernel reads a contiguous row window of the same slab -> no im2col patch
    matrix in HBM.  Output rows are at padded width (W+3); junk columns are sliced
    off in the wrapper.
    """
    C_out, C_in, KH, KW = w.shape
    N, H, W, C = x.shape
    assert (KH, KW) == (3, 3) and C == C_in
    Coutp = _round_up(C_out, 128)
    Wp = W + 3
    P = (H + 3) * Wp
    Mo = H * Wp
    tn = _pick_tile(Coutp)

    xp = jnp.pad(x.astype(jnp.bfloat16), ((0, 0), (1, 2), (1, 2), (0, 0)))
    xp = xp.reshape(N, P, C)
    w2 = jnp.transpose(w, (2, 3, 1, 0)).reshape(9 * C_in, C_out)
    w2 = _pad_to(w2.astype(jnp.float32), (9 * C_in, Coutp)).astype(jnp.bfloat16)
    scale, bias = bn
    s_p = _bn_rows(scale, Coutp)
    c_p = _bn_rows(bias, Coutp)

    out = pl.pallas_call(
        functools.partial(_conv3x3_s1_kernel, C=C_in, Wp=Wp, Mo=Mo, relu=relu),
        out_shape=jax.ShapeDtypeStruct((N, Mo, Coutp), jnp.float32),
        grid_spec=pltpu.PrefetchScalarGridSpec(
            num_scalar_prefetch=0,
            grid=(N, Coutp // tn),
            in_specs=[
                pl.BlockSpec((None, P, C), lambda n, j: (n, 0, 0)),
                pl.BlockSpec((9 * C_in, tn), lambda n, j: (0, j)),
                pl.BlockSpec((8, tn), lambda n, j: (0, j)),
                pl.BlockSpec((8, tn), lambda n, j: (0, j)),
            ],
            out_specs=pl.BlockSpec((None, Mo, tn), lambda n, j: (n, 0, j)),
        ),
        compiler_params=pltpu.CompilerParams(
            dimension_semantics=("parallel", "parallel")),
    )(xp, w2, s_p, c_p)
    return out.reshape(N, H, Wp, Coutp)[:, :, :W, :C_out]


# ------------------------------------------------ 3x3 stride-2 max pool (gridded)
def _max9_kernel(*refs):
    o_ref = refs[-1]
    m = refs[0][...]
    for r in refs[1:-1]:
        m = jnp.maximum(m, r[...])
    o_ref[...] = m


def maxpool_3x3_s2(x):
    # NHWC; kernel 3, stride 2, padding 1 (padding value -inf).
    N, H, W, C = x.shape
    k, s, pad = 3, 2, 1
    Ho = (H + 2 * pad - k) // s + 1
    Wo = (W + 2 * pad - k) // s + 1
    xp = jnp.pad(x, ((0, 0), (pad, pad), (pad, pad), (0, 0)),
                 constant_values=-jnp.inf)
    M = N * Ho * Wo
    Cp = _round_up(C, 128)
    tm, Mp = _tile_rows(M)
    slabs = []
    for i in range(k):
        for j in range(k):
            sl = lax.slice(xp, (0, i, j, 0),
                           (N, i + (Ho - 1) * s + 1, j + (Wo - 1) * s + 1, C),
                           (1, s, s, 1))
            slabs.append(_pad_to(sl.reshape(M, C), (Mp, Cp)))
    out = pl.pallas_call(
        _max9_kernel,
        out_shape=jax.ShapeDtypeStruct((Mp, Cp), jnp.float32),
        grid_spec=pltpu.PrefetchScalarGridSpec(
            num_scalar_prefetch=0,
            grid=(Mp // tm,),
            in_specs=[pl.BlockSpec((tm, Cp), lambda i: (i, 0))] * 9,
            out_specs=pl.BlockSpec((tm, Cp), lambda i: (i, 0)),
        ),
        compiler_params=pltpu.CompilerParams(dimension_semantics=("parallel",)),
    )(*slabs)
    return out[:M, :C].reshape(N, Ho, Wo, C)


# ------------------------------------------------ global average pool (gridded)
def _avgpool_kernel(x_ref, o_ref, *, inv_count):
    o_ref[...] = jnp.sum(x_ref[...], axis=1) * inv_count


def global_avgpool(x):
    # NHWC -> (N, C)   (AdaptiveAvgPool2d((1,1)) + flatten)
    N, H, W, C = x.shape
    M = H * W
    Np, Mp, Cp = _round_up(N, 8), _round_up(M, 8), _round_up(C, 128)
    x2 = _pad_to(x.reshape(N, M, C), (Np, Mp, Cp))
    tc = _pick_tile(Cp)
    out = pl.pallas_call(
        functools.partial(_avgpool_kernel, inv_count=1.0 / M),
        out_shape=jax.ShapeDtypeStruct((Np, Cp), jnp.float32),
        grid_spec=pltpu.PrefetchScalarGridSpec(
            num_scalar_prefetch=0,
            grid=(Np // 8, Cp // tc),
            in_specs=[pl.BlockSpec((8, Mp, tc), lambda i, j: (i, 0, j))],
            out_specs=pl.BlockSpec((8, tc), lambda i, j: (i, j)),
        ),
        compiler_params=pltpu.CompilerParams(
            dimension_semantics=("parallel", "parallel")),
    )(x2)
    return out[:N, :C]


# ------------------------------------------------ general conv (1x1 direct / im2col)
def _im2col(x, kh, kw, stride, pad):
    N, H, W, C = x.shape
    xp = jnp.pad(x, ((0, 0), (pad, pad), (pad, pad), (0, 0)))
    Ho = (H + 2 * pad - kh) // stride + 1
    Wo = (W + 2 * pad - kw) // stride + 1
    cols = []
    for i in range(kh):
        for j in range(kw):
            sl = lax.slice(xp, (0, i, j, 0),
                           (N, i + (Ho - 1) * stride + 1,
                            j + (Wo - 1) * stride + 1, C),
                           (1, stride, stride, 1))
            cols.append(sl)
    patches = jnp.concatenate(cols, axis=-1)
    return patches.reshape(N * Ho * Wo, kh * kw * C), Ho, Wo


def conv2d_bn(x, w, bn, stride, padding, relu, residual=None):
    # Only used for 1x1 convs and the few strided kxk convs (stem 7x7/2, 3x3/2);
    # stride-1 3x3 convs go through conv3x3_s1_bn (no im2col duplication).
    C_out, C_in, KH, KW = w.shape
    N, H, W_, C = x.shape
    assert C == C_in
    if KH == 1 and KW == 1 and padding == 0:
        xs = x if stride == 1 else x[:, ::stride, ::stride, :]
        Ho, Wo = xs.shape[1], xs.shape[2]
        patches = xs.reshape(N * Ho * Wo, C_in)
    else:
        patches, Ho, Wo = _im2col(x.astype(jnp.bfloat16), KH, KW, stride, padding)
    w2 = jnp.transpose(w, (2, 3, 1, 0)).reshape(KH * KW * C_in, C_out)
    scale, bias = bn
    res2 = None if residual is None else residual.reshape(N * Ho * Wo, C_out)
    y = matmul_scale_bias(patches, w2, scale, bias, relu=relu, residual=res2)
    return y.reshape(N, Ho, Wo, C_out)


# ------------------------------------------------ synthetic parameters
def _init_conv(key, c_out, c_in, kh, kw):
    fan_in = c_in * kh * kw
    return jax.random.normal(key, (c_out, c_in, kh, kw), jnp.float32) * jnp.sqrt(2.0 / fan_in)


def _init_bn(key, c, eps=1e-5):
    k1, k2, k3 = jax.random.split(key, 3)
    gamma = 1.0 + 0.1 * jax.random.normal(k1, (c,), jnp.float32)
    beta = 0.1 * jax.random.normal(k2, (c,), jnp.float32)
    mean = 0.1 * jax.random.normal(k3, (c,), jnp.float32)
    var = jnp.ones((c,), jnp.float32)
    scale = gamma / jnp.sqrt(var + eps)
    bias = beta - mean * scale
    return scale, bias


def init_params(key, num_class=10):
    keys = iter(jax.random.split(key, 512))
    nk = lambda: next(keys)
    params = {
        'stem_conv': _init_conv(nk(), 64, 3, 7, 7),
        'stem_bn': _init_bn(nk(), 64),
    }
    layers = []
    in_c = 64
    cfg = [(64, 3, 1), (128, 4, 2), (256, 6, 2), (512, 3, 2)]  # ResNet-50
    for width, blocks, stride in cfg:
        blks = []
        for b in range(blocks):
            s = stride if b == 0 else 1
            out_c = width * 4
            blk = {
                'stride': s,
                'conv1': _init_conv(nk(), width, in_c, 1, 1),
                'bn1': _init_bn(nk(), width),
                'conv2': _init_conv(nk(), width, width, 3, 3),
                'bn2': _init_bn(nk(), width),
                'conv3': _init_conv(nk(), out_c, width, 1, 1),
                'bn3': _init_bn(nk(), out_c),
            }
            if s != 1 or in_c != out_c:
                blk['down_conv'] = _init_conv(nk(), out_c, in_c, 1, 1)
                blk['down_bn'] = _init_bn(nk(), out_c)
            blks.append(blk)
            in_c = out_c
        layers.append(blks)
    params['layers'] = layers
    kf1, kf2 = jax.random.split(nk())
    params['fc_w'] = jax.random.normal(kf1, (num_class, 2048), jnp.float32) / jnp.sqrt(2048.0)
    params['fc_b'] = 0.01 * jax.random.normal(kf2, (num_class,), jnp.float32)
    return params


# ------------------------------------------------ forward pass
def bottleneck(x, blk):
    s = blk['stride']
    out = conv2d_bn(x, blk['conv1'], blk['bn1'], 1, 0, relu=True)
    if s == 1:
        out = conv3x3_s1_bn(out, blk['conv2'], blk['bn2'], relu=True)
    else:
        out = conv2d_bn(out, blk['conv2'], blk['bn2'], s, 1, relu=True)
    if 'down_conv' in blk:
        identity = conv2d_bn(x, blk['down_conv'], blk['down_bn'], s, 0, relu=False)
    else:
        identity = x
    # conv3 + BN + residual add + ReLU fused into one matmul epilogue
    return conv2d_bn(out, blk['conv3'], blk['bn3'], 1, 0, relu=True, residual=identity)


def activation_map_extractor_forward(params, x_nchw):
    """ActivationMapExtractor.forward: run every features module in order
    (conv1, bn1, relu, maxpool, layer1..4, avgpool), flatten, classifier,
    and return {'avgpool': classifier_output}."""
    x = jnp.transpose(x_nchw.astype(jnp.float32), (0, 2, 3, 1))  # NCHW -> NHWC
    # conv1 + bn1 + relu
    x = conv2d_bn(x, params['stem_conv'], params['stem_bn'], 2, 3, relu=True)
    # maxpool
    x = maxpool_3x3_s2(x)
    # layer1..layer4
    for layer in params['layers']:
        for blk in layer:
            x = bottleneck(x, blk)
    # avgpool (1,1) + flatten
    feat = global_avgpool(x)                                     # (N, 2048)
    # classifier: Linear(2048, num_class)
    ones = jnp.ones((params['fc_w'].shape[0],), jnp.float32)
    logits = matmul_scale_bias(feat, params['fc_w'].T, ones, params['fc_b'], relu=False)
    return {'avgpool': logits}


if __name__ == "__main__":
    key = jax.random.PRNGKey(0)
    kx, kp = jax.random.split(key)
    # Smallest spatial size that survives ResNet-50's /32 downsampling.
    x = jax.random.normal(kx, (2, 3, 32, 32), jnp.float32)
    params = init_params(kp, num_class=10)

    outputs = activation_map_extractor_forward(params, x)
    logits = jax.block_until_ready(outputs['avgpool'])

    assert logits.shape == (2, 10), logits.shape
    assert bool(jnp.all(jnp.isfinite(logits)))
    print("KERNEL_OK")
</pallas_src>

<mosaic_0001>
module attributes {stable_mosaic.version = 11 : i64} {
  func.func @_mm_kernel(%arg0: i32, %arg1: i32, %arg2: i32, %arg3: memref<512x256xbf16, #tpu.memory_space<vmem>>, %arg4: memref<256x128xbf16, #tpu.memory_space<vmem>>, %arg5: memref<8x128xf32, #tpu.memory_space<vmem>>, %arg6: memref<8x128xf32, #tpu.memory_space<vmem>>, %arg7: memref<512x128xf32, #tpu.memory_space<vmem>>) attributes {dimension_semantics = [#tpu.dimension_semantics<parallel>, #tpu.dimension_semantics<parallel>, #tpu.dimension_semantics<arbitrary>], iteration_bounds = array<i64: 1, 1, 1>, scalar_prefetch = 0 : i64, scratch_operands = 0 : i64, tpu.core_type = #tpu.core_type<tc>, window_params = [{transform_indices = @transform_0, window_bounds = array<i64: 512, 256>}, {transform_indices = @transform_1, window_bounds = array<i64: 256, 128>}, {transform_indices = @transform_2, window_bounds = array<i64: 8, 128>}, {transform_indices = @transform_3, window_bounds = array<i64: 8, 128>}, {transform_indices = @transform_4, window_bounds = array<i64: 512, 128>}]} {
    %c0_i32 = arith.constant 0 : i32
    %0 = arith.cmpi eq, %arg2, %c0_i32 : i32
    %1 = arith.extui %0 : i1 to i32
    %c0_i32_0 = arith.constant 0 : i32
    %2 = arith.cmpi ne, %1, %c0_i32_0 : i32
    scf.if %2 {
      %cst_10 = arith.constant 0.000000e+00 : f32
      %12 = vector.broadcast %cst_10 : f32 to vector<512x128xf32>
      %c0_11 = arith.constant 0 : index
      %c0_12 = arith.constant 0 : index
      %13 = vector.load %arg7[%c0_11, %c0_12] : memref<512x128xf32, #tpu.memory_space<vmem>>, vector<512x128xf32>
      tpu.vector_store %arg7[%c0_11, %c0_12], %12 {strides = array<i32>} : memref<512x128xf32, #tpu.memory_space<vmem>>, vector<512x128xf32>,
    } else {
    }
    %c0 = arith.constant 0 : index
    %c0_1 = arith.constant 0 : index
    %3 = vector.load %arg7[%c0, %c0_1] : memref<512x128xf32, #tpu.memory_space<vmem>>, vector<512x128xf32>
    %c0_2 = arith.constant 0 : index
    %c0_3 = arith.constant 0 : index
    %4 = vector.load %arg3[%c0_2, %c0_3] : memref<512x256xbf16, #tpu.memory_space<vmem>>, vector<512x256xbf16>
    %c0_4 = arith.constant 0 : index
    %c0_5 = arith.constant 0 : index
    %5 = vector.load %arg4[%c0_4, %c0_5] : memref<256x128xbf16, #tpu.memory_space<vmem>>, vector<256x128xbf16>
    %cst = arith.constant dense<0.000000e+00> : vector<512x128xf32>
    %6 = tpu.matmul %4, %5, %cst {dimension_numbers = #tpu.dot_dimension_numbers<[1], [0], [0], [1], [0, 0, 1, 1], [], []>} : vector<512x256xbf16>, vector<256x128xbf16>, vector<512x128xf32> -> vector<512x128xf32>
    %7 = arith.addf %3, %6 : vector<512x128xf32>
    %c0_6 = arith.constant 0 : index
    %c0_7 = arith.constant 0 : index
    %8 = vector.load %arg7[%c0_6, %c0_7] : memref<512x128xf32, #tpu.memory_space<vmem>>, vector<512x128xf32>
    tpu.vector_store %arg7[%c0_6, %c0_7], %7 {strides = array<i32>} : memref<512x128xf32, #tpu.memory_space<vmem>>, vector<512x128xf32>,
    %c0_i32_8 = arith.constant 0 : i32
    %9 = arith.cmpi eq, %arg2, %c0_i32_8 : i32
    %10 = arith.extui %9 : i1 to i32
    %c0_i32_9 = arith.constant 0 : i32
    %11 = arith.cmpi ne, %10, %c0_i32_9 : i32
    scf.if %11 {
      %c0_10 = arith.constant 0 : index
      %c0_11 = arith.constant 0 : index
      %12 = vector.load %arg7[%c0_10, %c0_11] : memref<512x128xf32, #tpu.memory_space<vmem>>, vector<512x128xf32>
      %c0_12 = arith.constant 0 : index
      %c0_13 = arith.constant 0 : index
      %13 = vector.load %arg5[%c0_12, %c0_13] : memref<8x128xf32, #tpu.memory_space<vmem>>, vector<1x128xf32>
      %14 = vector.broadcast %13 : vector<1x128xf32> to vector<512x128xf32>
      %15 = arith.mulf %12, %14 : vector<512x128xf32>
      %c0_14 = arith.constant 0 : index
      %c0_15 = arith.constant 0 : index
      %16 = vector.load %arg6[%c0_14, %c0_15] : memref<8x128xf32, #tpu.memory_space<vmem>>, vector<1x128xf32>
      %17 = vector.broadcast %16 : vector<1x128xf32> to vector<512x128xf32>
      %18 = arith.addf %15, %17 : vector<512x128xf32>
      %cst_16 = arith.constant 0.000000e+00 : f32
      %19 = vector.broadcast %cst_16 : f32 to vector<512x128xf32>
      %20 = arith.maximumf %18, %19 : vector<512x128xf32>
      %c0_17 = arith.constant 0 : index
      %c0_18 = arith.constant 0 : index
      %21 = vector.load %arg7[%c0_17, %c0_18] : memref<512x128xf32, #tpu.memory_space<vmem>>, vector<512x128xf32>
      tpu.vector_store %arg7[%c0_17, %c0_18], %20 {strides = array<i32>} : memref<512x128xf32, #tpu.memory_space<vmem>>, vector<512x128xf32>,
    } else {
    }
    return
  }
  func.func @transform_0(%arg0: i32, %arg1: i32, %arg2: i32) -> (i32, i32) {
    %c0_i32 = arith.constant 0 : i32
    return %arg0, %arg2 : i32, i32
  }
  func.func @transform_1(%arg0: i32, %arg1: i32, %arg2: i32) -> (i32, i32) {
    %c0_i32 = arith.constant 0 : i32
    return %arg2, %arg1 : i32, i32
  }
  func.func @transform_2(%arg0: i32, %arg1: i32, %arg2: i32) -> (i32, i32) {
    %c0_i32 = arith.constant 0 : i32
    %c0_i32_0 = arith.constant 0 : i32
    return %c0_i32, %arg1 : i32, i32
  }
  func.func @transform_3(%arg0: i32, %arg1: i32, %arg2: i32) -> (i32, i32) {
    %c0_i32 = arith.constant 0 : i32
    %c0_i32_0 = arith.constant 0 : i32
    return %c0_i32, %arg1 : i32, i32
  }
  func.func @transform_4(%arg0: i32, %arg1: i32, %arg2: i32) -> (i32, i32) {
    %c0_i32 = arith.constant 0 : i32
    return %arg0, %arg1 : i32, i32
  }
}

</mosaic_0001>

<bundles_post_ra>
// kernel: tpu_custom_call.1
= control target key start
LH: loop header
LB: loop body
LE: loop exit
PB: predicated region body
PF: predicated region fallthrough
CT: control target
= control target key end

     0   :  { %9 = vsyncpa [#allocation3], 0  ;;  %s2284_s0 = inlined_call_operand.hbm [shape: bf16[512,256], index: 0, kind: input, shape index: {}]   ;;  %s2285_s1 = inlined_call_operand.hbm [shape: bf16[256,128], index: 1, kind: input, shape index: {}]   ;;  %s2286_s2 = inlined_call_operand.hbm [shape: f32[8,128], index: 2, kind: input, shape index: {}]   ;;  %s2287_s3 = inlined_call_operand.hbm [shape: f32[8,128], index: 3, kind: input, shape index: {}]   ;;  %s2288_s4 = inlined_call_operand.hbm [shape: f32[512,128], index: 4, kind: output, shape index: {}]  }
   0x1   :  { %10 = vsyncpa [#allocation6], 0 }
   0x2   :  { %11 = vsyncpa [#allocation9], 0  ;;  %s30_s17 = sshll.u32 %s2285_s1, 4  ;;  %s31_s17 = int_to_ptr.hbm [resolvable:$true] %s30_s17 }
   0x3   :  { %12 = vsyncpa [#allocation4], 0  ;;  %s2093_s18 = smov [#allocation5]   ;;  %s17_s22 = sshll.u32 %s2284_s0, 4  ;;  %s18_s22 = int_to_ptr.hbm [resolvable:$true] %s17_s22 }
   0x4   :  { %s32_s19 = sshll.u32 %s2093_s18, 4  ;;  %s2094_s23 = smov 64   ;;  %s33_s19 = int_to_ptr.vmem [resolvable:$true] %s32_s19 }
   0x5   :  { %s2095_s24 = smov 4   ;;  %s2096_s25 = smov [#allocation2]  }
   0x6   :  { %38 = dma.hbm_to_vmem [thread:$0]  %s31_s17, 2048, %s33_s19, [#allocation6], %s2094_s23, %s2094_s23, %s2095_s24  }
   0x7   :  { %s19_s26 = sshll.u32 %s2096_s25, 4  ;;  %s2097_s27 = smov 128   ;;  %s20_s26 = int_to_ptr.vmem [resolvable:$true] %s19_s26 }
   0x8   :  { %s2098_s28 = smov 8   ;;  %s44_s30 = sshll.u32 %s2286_s2, 4  ;;  %s45_s30 = int_to_ptr.hbm [resolvable:$true] %s44_s30 }
   0x9   :  { %25 = dma.hbm_to_vmem [thread:$0]  %s18_s22, 8192, %s20_s26, [#allocation3], %s2097_s27, %s2097_s27, %s2098_s28  }
   0xa   :  { %s2099_s5 = smov [#allocation7]   ;;  %s55_s8 = sshll.u32 %s2287_s3, 4  ;;  %s56_s8 = int_to_ptr.hbm [resolvable:$true] %s55_s8 }
   0xb   :  { %s46_s0 = sshll.u32 %s2099_s5, 4  ;;  %s2100_s9 = smov [#allocation8]   ;;  %s47_s0 = int_to_ptr.vmem [resolvable:$true] %s46_s0 }
   0xc   :  { %49 = dma.hbm_to_vmem [thread:$0]  %s45_s30, 128, %s47_s0, [#allocation6]  }
   0xd   :  { %s57_s10 = sshll.u32 %s2100_s9, 4  ;;  %s58_s10 = int_to_ptr.vmem [resolvable:$true] %s57_s10 }
   0xe   :  { %60 = dma.hbm_to_vmem [thread:$0]  %s56_s8, 128, %s58_s10, [#allocation9]  }
   0xf   :  { %2085 = dma.done.wait [#allocation3], 8192  }
  0x10   :  { %2086 = vsyncadd [#allocation3], 4294959104 }
  0x11   :  { %2087 = dma.done.wait [#allocation6], 2176  }
  0x12   :  { %2088 = vsyncadd [#allocation6], 4294965120 }
  0x13   :  { %2089 = dma.done.wait [#allocation9], 128  }
  0x14   :  { %2090 = vsyncadd [#allocation9], 4294967168  ;;  %v1926_v0 = vld [vmem:[#allocation5 + $0x38] sm:$0xff]  ;;  %v1925_v2 = vld [vmem:[#allocation5 + $0x30] sm:$0xff]  ;;  %s2101_s2 = smov [#allocation10]   ;;  %s1520_s13 = sshll.u32 %s2288_s4, 4  ;;  %s1521_s13 = int_to_ptr.hbm [resolvable:$true] %s1520_s13 }
  0x15   :  { %v1934_v1 = vld [vmem:[#allocation5 + $0x78] sm:$0xff]  ;;  %721 = vmatpush.bf16.msra.mxu0 %v1926_v0  ;;  %1935 = vmatpush.bf16.msra.mxu2 %v1926_v0  ;;  %v1933_v3 = vld [vmem:[#allocation5 + $0x70] sm:$0xff]  ;;  %v1924_v4 = vld [vmem:[#allocation5 + $0x28] sm:$0xff]  ;;  %s1518_s3 = sshll.u32 %s2101_s2, 4  ;;  %s1519_s3 = int_to_ptr.vmem [resolvable:$true] %s1518_s3 }
  0x16   :  { %890 = vmatpush.bf16.msra.mxu1 %v1934_v1  ;;  %1943 = vmatpush.bf16.msra.mxu3 %v1934_v1  ;;  %v1932_v5 = vld [vmem:[#allocation5 + $0x68] sm:$0xff]  ;;  %v1923_v6 = vld [vmem:[#allocation5 + $0x20] sm:$0xff]  ;;  %v1922_v8 = vld [vmem:[#allocation5 + $0x18] sm:$0xff] }
  0x17   :  { %v1931_v7 = vld [vmem:[#allocation5 + $0x60] sm:$0xff]  ;;  %v1930_v9 = vld [vmem:[#allocation5 + $0x58] sm:$0xff]  ;;  %v1921_v10 = vld [vmem:[#allocation5 + $0x10] sm:$0xff] }
  0x18   :  { %v1929_v11 = vld [vmem:[#allocation5 + $0x50] sm:$0xff]  ;;  %v1920_v12 = vld [vmem:[#allocation5 + $0x8] sm:$0xff]  ;;  %v1919_v14 = vld [vmem:[#allocation5] sm:$0xff] }
  0x19   :  { %722 = vmatpush.bf16.msra.mxu0 %v1925_v2  ;;  %1936 = vmatpush.bf16.msra.mxu2 %v1925_v2  ;;  %v1928_v13 = vld [vmem:[#allocation5 + $0x48] sm:$0xff]  ;;  %v1927_v15 = vld [vmem:[#allocation5 + $0x40] sm:$0xff]  ;;  %v1545_v28 = vld [vmem:[#allocation2 + $0x10] sm:$0xf] }
  0x1a   :  { %891 = vmatpush.bf16.msra.mxu1 %v1933_v3  ;;  %1944 = vmatpush.bf16.msra.mxu3 %v1933_v3  ;;  %v1537_v16 = vld [vmem:[#allocation2] sm:$0xf]  ;;  %v1856_v17 = vld [vmem:[#allocation2 + $0x4] sm:$0xf0]  ;;  %v1855_v20 = vld [vmem:[#allocation2 + $0x4] sm:$0xf] }
  0x1b   :  { %v1665_v18 = vld [vmem:[#allocation2 + $0x100] sm:$0xf]  ;;  %v1888_v19 = vld [vmem:[#allocation2 + $0x104] sm:$0xf0]  ;;  %v1539_v21 = vld [vmem:[#allocation2 + $0x8] sm:$0xf0]  ;;  %v1538_v24 = vor.u32 %v1856_v17, %v1537_v16 }
  0x1c   :  { %v1887_v22 = vld [vmem:[#allocation2 + $0x104] sm:$0xf]  ;;  %v1667_v23 = vld [vmem:[#allocation2 + $0x108] sm:$0xf0]  ;;  %v1666_v25 = vor.u32 %v1888_v19, %v1665_v18  ;;  %v1542_v26 = vor.u32 %v1855_v20, %v1539_v21  ;;  %v1858_v29 = vld [vmem:[#allocation2 + $0x14] sm:$0xf0] }
  0x1d   :  { %723 = vmatpush.bf16.msra.mxu0 %v1924_v4  ;;  %1937 = vmatpush.bf16.msra.mxu2 %v1924_v4  ;;  %v1670_v27 = vor.u32 %v1887_v22, %v1667_v23  ;;  %v1673_v30 = vld [vmem:[#allocation2 + $0x110] sm:$0xf]  ;;  %v1890_v31 = vld [vmem:[#allocation2 + $0x114] sm:$0xf0]  ;;  %v1857_v32 = vld [vmem:[#allocation2 + $0x14] sm:$0xf]  ;;  %v1546_v36 = vor.u32 %v1858_v29, %v1545_v28 }
  0x1e   :  { %892 = vmatpush.bf16.msra.mxu1 %v1932_v5  ;;  %1945 = vmatpush.bf16.msra.mxu3 %v1932_v5  ;;  %v1547_v33 = vld [vmem:[#allocation2 + $0x18] sm:$0xf0]  ;;  %v1889_v34 = vld [vmem:[#allocation2 + $0x114] sm:$0xf]  ;;  %v1674_v37 = vor.u32 %v1890_v31, %v1673_v30  ;;  %v1553_v40 = vld [vmem:[#allocation2 + $0x20] sm:$0xf] }
  0x1f   :  { %v1675_v35 = vld [vmem:[#allocation2 + $0x118] sm:$0xf0]  ;;  %v1550_v38 = vor.u32 %v1857_v32, %v1547_v33  ;;  %v1860_v41 = vld [vmem:[#allocation2 + $0x24] sm:$0xf0]  ;;  %v1681_v42 = vld [vmem:[#allocation2 + $0x120] sm:$0xf] }
  0x20   :  { %v1678_v39 = vor.u32 %v1889_v34, %v1675_v35  ;;  %v1892_v43 = vld [vmem:[#allocation2 + $0x124] sm:$0xf0]  ;;  %v1859_v44 = vld [vmem:[#allocation2 + $0x24] sm:$0xf]  ;;  %v1555_v45 = vld [vmem:[#allocation2 + $0x28] sm:$0xf0]  ;;  %v1554_v48 = vor.u32 %v1860_v41, %v1553_v40 }
  0x21   :  { %724 = vmatpush.bf16.msra.mxu0 %v1923_v6  ;;  %1938 = vmatpush.bf16.msra.mxu2 %v1923_v6  ;;  %v1891_v46 = vld [vmem:[#allocation2 + $0x124] sm:$0xf]  ;;  %v1683_v47 = vld [vmem:[#allocation2 + $0x128] sm:$0xf0]  ;;  %v1682_v49 = vor.u32 %v1892_v43, %v1681_v42  ;;  %v1558_v50 = vor.u32 %v1859_v44, %v1555_v45  ;;  %v1561_v52 = vld [vmem:[#allocation2 + $0x30] sm:$0xf] }
  0x22   :  { %893 = vmatpush.bf16.msra.mxu1 %v1931_v7  ;;  %1946 = vmatpush.bf16.msra.mxu3 %v1931_v7  ;;  %v1686_v51 = vor.u32 %v1891_v46, %v1683_v47  ;;  %v1862_v53 = vld [vmem:[#allocation2 + $0x34] sm:$0xf0]  ;;  %v1689_v54 = vld [vmem:[#allocation2 + $0x130] sm:$0xf]  ;;  %v1861_v56 = vld [vmem:[#allocation2 + $0x34] sm:$0xf] }
  0x23   :  { %v1894_v55 = vld [vmem:[#allocation2 + $0x134] sm:$0xf0]  ;;  %v1563_v57 = vld [vmem:[#allocation2 + $0x38] sm:$0xf0]  ;;  %v1893_v58 = vld [vmem:[#allocation2 + $0x134] sm:$0xf]  ;;  %v1562_v60 = vor.u32 %v1862_v53, %v1561_v52 }
  0x24   :  { %v1691_v59 = vld [vmem:[#allocation2 + $0x138] sm:$0xf0]  ;;  %v1690_v61 = vor.u32 %v1894_v55, %v1689_v54  ;;  %v1566_v62 = vor.u32 %v1861_v56, %v1563_v57  ;;  %v1569_v0 = vld [vmem:[#allocation2 + $0x40] sm:$0xf]  ;;  %v1864_v1 = vld [vmem:[#allocation2 + $0x44] sm:$0xf0] }
  0x25   :  { %725 = vmatpush.bf16.msra.mxu0 %v1922_v8  ;;  %1939 = vmatpush.bf16.msra.mxu2 %v1922_v8  ;;  %v1694_v63 = vor.u32 %v1893_v58, %v1691_v59  ;;  %v1697_v2 = vld [vmem:[#allocation2 + $0x140] sm:$0xf]  ;;  %v1896_v3 = vld [vmem:[#allocation2 + $0x144] sm:$0xf0]  ;;  %v1863_v4 = vld [vmem:[#allocation2 + $0x44] sm:$0xf]  ;;  %v1570_v8 = vor.u32 %v1864_v1, %v1569_v0 }
  0x26   :  { %894 = vmatpush.bf16.msra.mxu1 %v1930_v9  ;;  %1947 = vmatpush.bf16.msra.mxu3 %v1930_v9  ;;  %v1571_v5 = vld [vmem:[#allocation2 + $0x48] sm:$0xf0]  ;;  %v1895_v6 = vld [vmem:[#allocation2 + $0x144] sm:$0xf]  ;;  %v1698_v9 = vor.u32 %v1896_v3, %v1697_v2  ;;  %v1865_v16 = vld [vmem:[#allocation2 + $0x54] sm:$0xf] }
  0x27   :  { %v1699_v7 = vld [vmem:[#allocation2 + $0x148] sm:$0xf0]  ;;  %v1579_v17 = vld [vmem:[#allocation2 + $0x58] sm:$0xf0]  ;;  %v1897_v18 = vld [vmem:[#allocation2 + $0x154] sm:$0xf] }
  0x28   :  { %v1707_v19 = vld [vmem:[#allocation2 + $0x158] sm:$0xf0]  ;;  %v1582_v22 = vor.u32 %v1865_v16, %v1579_v17  ;;  %v1867_v28 = vld [vmem:[#allocation2 + $0x64] sm:$0xf]  ;;  %v1587_v29 = vld [vmem:[#allocation2 + $0x68] sm:$0xf0] }
  0x29   :  { %726 = vmatpush.bf16.msra.mxu0 %v1921_v10  ;;  %1940 = vmatpush.bf16.msra.mxu2 %v1921_v10  ;;  %v1574_v10 = vor.u32 %v1863_v4, %v1571_v5  ;;  %v1710_v23 = vor.u32 %v1897_v18, %v1707_v19  ;;  %v1899_v30 = vld [vmem:[#allocation2 + $0x164] sm:$0xf]  ;;  %v1715_v31 = vld [vmem:[#allocation2 + $0x168] sm:$0xf0]  ;;  %v1590_v34 = vor.u32 %v1867_v28, %v1587_v29  ;;  %v1869_v40 = vld [vmem:[#allocation2 + $0x74] sm:$0xf] }
  0x2a   :  { %895 = vmatpush.bf16.msra.mxu1 %v1929_v11  ;;  %1948 = vmatpush.bf16.msra.mxu3 %v1929_v11  ;;  %v1702_v11 = vor.u32 %v1895_v6, %v1699_v7  ;;  %v1718_v35 = vor.u32 %v1899_v30, %v1715_v31  ;;  %v1595_v41 = vld [vmem:[#allocation2 + $0x78] sm:$0xf0]  ;;  %v1901_v42 = vld [vmem:[#allocation2 + $0x174] sm:$0xf]  ;;  %v1871_v52 = vld [vmem:[#allocation2 + $0x84] sm:$0xf] }
  0x2b   :  { %v1723_v43 = vld [vmem:[#allocation2 + $0x178] sm:$0xf0]  ;;  %v1598_v46 = vor.u32 %v1869_v40, %v1595_v41  ;;  %v1603_v53 = vld [vmem:[#allocation2 + $0x88] sm:$0xf0]  ;;  %v1903_v54 = vld [vmem:[#allocation2 + $0x184] sm:$0xf] }
  0x2c   :  { %v1726_v47 = vor.u32 %v1901_v42, %v1723_v43  ;;  %v1731_v55 = vld [vmem:[#allocation2 + $0x188] sm:$0xf0]  ;;  %v1606_v59 = vor.u32 %v1871_v52, %v1603_v53  ;;  %v2144_v0 = vld [vmem:[#allocation8] ss:$0 sm:$0xff]  ;;  %v1611_v16 = vld [vmem:[#allocation2 + $0x98] sm:$0xf0] }
  0x2d   :  { %727 = vmatpush.bf16.msra.mxu0 %v1920_v12  ;;  %1941 = vmatpush.bf16.msra.mxu2 %v1920_v12  ;;  %v1577_v12 = vld [vmem:[#allocation2 + $0x50] sm:$0xf]  ;;  %v1905_v17 = vld [vmem:[#allocation2 + $0x194] sm:$0xf]  ;;  %v1739_v18 = vld [vmem:[#allocation2 + $0x198] sm:$0xf0] }
  0x2e   :  { %896 = vmatpush.bf16.msra.mxu1 %v1928_v13  ;;  %1949 = vmatpush.bf16.msra.mxu3 %v1928_v13  ;;  %v1866_v13 = vld [vmem:[#allocation2 + $0x54] sm:$0xf0]  ;;  %v1742_v30 = vor.u32 %v1905_v17, %v1739_v18  ;;  %v1619_v52 = vld [vmem:[#allocation2 + $0xa8] sm:$0xf0]  ;;  %v1907_v53 = vld [vmem:[#allocation2 + $0x1a4] sm:$0xf] }
  0x2f   :  { %v1578_v20 = vor.u32 %v1866_v13, %v1577_v12  ;;  %v1737_v12 = vld [vmem:[#allocation2 + $0x190] sm:$0xf]  ;;  %v1906_v13 = vld [vmem:[#allocation2 + $0x194] sm:$0xf0] }
  0x31   :  { %728 = vmatpush.bf16.msra.mxu0 %v1919_v14  ;;  %1942 = vmatpush.bf16.msra.mxu2 %v1919_v14  ;;  %v1705_v14 = vld [vmem:[#allocation2 + $0x150] sm:$0xf] }
  0x32   :  { %897 = vmatpush.bf16.msra.mxu1 %v1927_v15  ;;  %1950 = vmatpush.bf16.msra.mxu3 %v1927_v15  ;;  %v1898_v15 = vld [vmem:[#allocation2 + $0x154] sm:$0xf0] }
  0x33   :  { %v1706_v21 = vor.u32 %v1898_v15, %v1705_v14  ;;  %v1873_v15 = vld [vmem:[#allocation2 + $0x94] sm:$0xf] }
  0x34   :  { %729 = vmatmul.bf16.vlgmr.msra.gmra.mxu0 %v1538_v24  ;;  %809 = vmatmul.bf16.vlgmr.msra.gmra.mxu2 %v1666_v25  ;;  %v1585_v24 = vld [vmem:[#allocation2 + $0x60] sm:$0xf]  ;;  %v1868_v25 = vld [vmem:[#allocation2 + $0x64] sm:$0xf0] }
  0x35   :  { %898 = vmatmul.bf16.vlgmr.msra.gmra.mxu1 %v1542_v26  ;;  %978 = vmatmul.bf16.vlgmr.msra.gmra.mxu3 %v1670_v27  ;;  %v1713_v26 = vld [vmem:[#allocation2 + $0x160] sm:$0xf]  ;;  %v1900_v27 = vld [vmem:[#allocation2 + $0x164] sm:$0xf0]  ;;  %v1586_v32 = vor.u32 %v1868_v25, %v1585_v24  ;;  %v1738_v24 = vor.u32 %v1906_v13, %v1737_v12  ;;  %v1614_v25 = vor.u32 %v1873_v15, %v1611_v16 }
  0x36   :  { %v1714_v33 = vor.u32 %v1900_v27, %v1713_v26 }
  0x44   :  { %734 = vmatmul.bf16.gmra.mxu0 %v1546_v36  ;;  %814 = vmatmul.bf16.gmra.mxu2 %v1674_v37  ;;  %v1593_v36 = vld [vmem:[#allocation2 + $0x70] sm:$0xf]  ;;  %v1870_v37 = vld [vmem:[#allocation2 + $0x74] sm:$0xf0] }
  0x45   :  { %903 = vmatmul.bf16.gmra.mxu1 %v1550_v38  ;;  %983 = vmatmul.bf16.gmra.mxu3 %v1678_v39  ;;  %v1721_v38 = vld [vmem:[#allocation2 + $0x170] sm:$0xf]  ;;  %v1902_v39 = vld [vmem:[#allocation2 + $0x174] sm:$0xf0]  ;;  %v1594_v44 = vor.u32 %v1870_v37, %v1593_v36 }
  0x46   :  { %v1722_v45 = vor.u32 %v1902_v39, %v1721_v38 }
  0x54   :  { %739 = vmatmul.bf16.gmra.mxu0 %v1554_v48  ;;  %819 = vmatmul.bf16.gmra.mxu2 %v1682_v49  ;;  %v1601_v48 = vld [vmem:[#allocation2 + $0x80] sm:$0xf]  ;;  %v1872_v49 = vld [vmem:[#allocation2 + $0x84] sm:$0xf0] }
  0x55   :  { %908 = vmatmul.bf16.gmra.mxu1 %v1558_v50  ;;  %988 = vmatmul.bf16.gmra.mxu3 %v1686_v51  ;;  %v1729_v50 = vld [vmem:[#allocation2 + $0x180] sm:$0xf]  ;;  %v1904_v51 = vld [vmem:[#allocation2 + $0x184] sm:$0xf0]  ;;  %v1602_v56 = vor.u32 %v1872_v49, %v1601_v48 }
  0x56   :  { %v1730_v57 = vor.u32 %v1904_v51, %v1729_v50  ;;  %v1745_v48 = vld [vmem:[#allocation2 + $0x1a0] sm:$0xf]  ;;  %v1908_v49 = vld [vmem:[#allocation2 + $0x1a4] sm:$0xf0]  ;;  %v1875_v51 = vld [vmem:[#allocation2 + $0xa4] sm:$0xf] }
  0x64   :  { %744 = vmatmul.bf16.gmra.mxu0 %v1562_v60  ;;  %824 = vmatmul.bf16.gmra.mxu2 %v1690_v61  ;;  %v1734_v60 = vor.u32 %v1903_v54, %v1731_v55  ;;  %v1747_v54 = vld [vmem:[#allocation2 + $0x1a8] sm:$0xf0] }
  0x65   :  { %913 = vmatmul.bf16.gmra.mxu1 %v1566_v62  ;;  %993 = vmatmul.bf16.gmra.mxu3 %v1694_v63  ;;  %v2142_v63 = vld [vmem:[#allocation7] ss:$0 sm:$0xff] }
  0x74   :  { %749 = vmatmul.bf16.gmra.mxu0 %v1570_v8  ;;  %829 = vmatmul.bf16.gmra.mxu2 %v1698_v9 }
  0x75   :  { %918 = vmatmul.bf16.gmra.mxu1 %v1574_v10  ;;  %998 = vmatmul.bf16.gmra.mxu3 %v1702_v11  ;;  %v1609_v10 = vld [vmem:[#allocation2 + $0x90] sm:$0xf]  ;;  %v1874_v11 = vld [vmem:[#allocation2 + $0x94] sm:$0xf0] }
  0x84   :  { %754 = vmatmul.bf16.gmra.mxu0 %v1578_v20  ;;  %834 = vmatmul.bf16.gmra.mxu2 %v1706_v21 }
  0x85   :  { %923 = vmatmul.bf16.gmra.mxu1 %v1582_v22  ;;  %1003 = vmatmul.bf16.gmra.mxu3 %v1710_v23  ;;  %v1610_v23 = vor.u32 %v1874_v11, %v1609_v10 }
  0x94   :  { %759 = vmatmul.bf16.gmra.mxu0 %v1586_v32  ;;  %839 = vmatmul.bf16.gmra.mxu2 %v1714_v33 }
  0x95   :  { %928 = vmatmul.bf16.gmra.mxu1 %v1590_v34  ;;  %1008 = vmatmul.bf16.gmra.mxu3 %v1718_v35 }
  0xa4   :  { %764 = vmatmul.bf16.gmra.mxu0 %v1594_v44  ;;  %844 = vmatmul.bf16.gmra.mxu2 %v1722_v45 }
  0xa5   :  { %933 = vmatmul.bf16.gmra.mxu1 %v1598_v46  ;;  %1013 = vmatmul.bf16.gmra.mxu3 %v1726_v47  ;;  %v1617_v46 = vld [vmem:[#allocation2 + $0xa0] sm:$0xf]  ;;  %v1876_v47 = vld [vmem:[#allocation2 + $0xa4] sm:$0xf0] }
  0xb1   :  { %v730_v58 = vpop.f32.mrf.mxu0 }
  0xb2   :  { %v899_v61 = vpop.f32.mrf.mxu1 }
  0xb3   :  { %v900_v62 = vadd.f32 %v899_v61, %v730_v58  ;;  %v1622_v61 = vor.u32 %v1875_v51, %v1619_v52 }
  0xb4   :  { %769 = vmatmul.bf16.gmra.mxu0 %v1602_v56  ;;  %849 = vmatmul.bf16.gmra.mxu2 %v1730_v57 }
  0xb5   :  { %938 = vmatmul.bf16.gmra.mxu1 %v1606_v59  ;;  %1018 = vmatmul.bf16.gmra.mxu3 %v1734_v60  ;;  %v1256_v1 = vmul.f32 %v2142_v63, %v900_v62  ;;  %v1618_v59 = vor.u32 %v1876_v47, %v1617_v46  ;;  %v1746_v60 = vor.u32 %v1908_v49, %v1745_v48 }
  0xb7   :  { %v810_v2 = vpop.f32.mrf.mxu2  ;;  %v1322_v4 = vadd.f32 %v2144_v0, %v1256_v1 }
  0xb8   :  { %v979_v3 = vpop.f32.mrf.mxu3 }
  0xb9   :  { %v980_v5 = vadd.f32 %v979_v3, %v810_v2  ;;  %v732_v6 = vpop.f32.mrf.mxu0  ;;  %v1386_v8 = vmax.f32 %v1322_v4, 0.0  ;;  %v1750_v4 = vor.u32 %v1907_v53, %v1747_v54 }
  0xba   :  { %v901_v7 = vpop.f32.mrf.mxu1 }
  0xbb   :  { %v902_v9 = vadd.f32 %v901_v7, %v732_v6  ;;  %1450 = vst [vmem:[#allocation10] sm:$0xff] %v1386_v8  ;;  %v1288_v14 = vmul.f32 %v2142_v63, %v980_v5 }
  0xbd   :  { %v1354_v19 = vadd.f32 %v2144_v0, %v1288_v14  ;;  %v1257_v20 = vmul.f32 %v2142_v63, %v902_v9 }
  0xbf   :  { %v812_v21 = vpop.f32.mrf.mxu2  ;;  %v1418_v26 = vmax.f32 %v1354_v19, 0.0  ;;  %v1323_v27 = vadd.f32 %v2144_v0, %v1257_v20  ;;  %v1625_v20 = vld [vmem:[#allocation2 + $0xb0] sm:$0xf] }
  0xc0   :  { %v981_v22 = vpop.f32.mrf.mxu3 }
  0xc1   :  { %v982_v28 = vadd.f32 %v981_v22, %v812_v21  ;;  %v735_v29 = vpop.f32.mrf.mxu0  ;;  %1482 = vst [vmem:[#allocation10 + $0x100] sm:$0xff] %v1418_v26  ;;  %v1387_v32 = vmax.f32 %v1323_v27, 0.0  ;;  %v1878_v21 = vld [vmem:[#allocation2 + $0xb4] sm:$0xf0]  ;;  %v1753_v22 = vld [vmem:[#allocation2 + $0x1b0] sm:$0xf] }
  0xc2   :  { %v904_v31 = vpop.f32.mrf.mxu1  ;;  %v1627_v26 = vld [vmem:[#allocation2 + $0xb8] sm:$0xf0]  ;;  %v1909_v27 = vld [vmem:[#allocation2 + $0x1b4] sm:$0xf] }
  0xc3   :  { %v905_v33 = vadd.f32 %v904_v31, %v735_v29  ;;  %1451 = vst [vmem:[#allocation10 + $0x8] sm:$0xff] %v1387_v32  ;;  %v1289_v34 = vmul.f32 %v2142_v63, %v982_v28  ;;  %v1755_v28 = vld [vmem:[#allocation2 + $0x1b8] sm:$0xf0] }
  0xc4   :  { %774 = vmatmul.bf16.gmra.mxu0 %v1610_v23  ;;  %854 = vmatmul.bf16.gmra.mxu2 %v1738_v24  ;;  %v1910_v23 = vld [vmem:[#allocation2 + $0x1b4] sm:$0xf0] }
  0xc5   :  { %943 = vmatmul.bf16.gmra.mxu1 %v1614_v25  ;;  %1023 = vmatmul.bf16.gmra.mxu3 %v1742_v30  ;;  %v1355_v35 = vadd.f32 %v2144_v0, %v1289_v34  ;;  %v1258_v36 = vmul.f32 %v2142_v63, %v905_v33  ;;  %v1877_v25 = vld [vmem:[#allocation2 + $0xb4] sm:$0xf]  ;;  %v1626_v33 = vor.u32 %v1878_v21, %v1625_v20 }
  0xc6   :  { %v1754_v34 = vor.u32 %v1910_v23, %v1753_v22 }
  0xc7   :  { %v815_v37 = vpop.f32.mrf.mxu2  ;;  %v1419_v39 = vmax.f32 %v1355_v35, 0.0  ;;  %v1324_v40 = vadd.f32 %v2144_v0, %v1258_v36  ;;  %v1630_v35 = vor.u32 %v1877_v25, %v1627_v26 }
  0xc8   :  { %v984_v38 = vpop.f32.mrf.mxu3 }
  0xc9   :  { %v985_v41 = vadd.f32 %v984_v38, %v815_v37  ;;  %v737_v42 = vpop.f32.mrf.mxu0  ;;  %1483 = vst [vmem:[#allocation10 + $0x108] sm:$0xff] %v1419_v39  ;;  %v1388_v44 = vmax.f32 %v1324_v40, 0.0  ;;  %v1758_v40 = vor.u32 %v1909_v27, %v1755_v28 }
  0xca   :  { %v906_v43 = vpop.f32.mrf.mxu1 }
  0xcb   :  { %v907_v45 = vadd.f32 %v906_v43, %v737_v42  ;;  %1452 = vst [vmem:[#allocation10 + $0x10] sm:$0xff] %v1388_v44  ;;  %v1290_v50 = vmul.f32 %v2142_v63, %v985_v41 }
  0xcd   :  { %v1356_v55 = vadd.f32 %v2144_v0, %v1290_v50  ;;  %v1259_v56 = vmul.f32 %v2142_v63, %v907_v45 }
  0xcf   :  { %v817_v57 = vpop.f32.mrf.mxu2  ;;  %v1420_v62 = vmax.f32 %v1356_v55, 0.0  ;;  %v1325_v1 = vadd.f32 %v2144_v0, %v1259_v56  ;;  %v1633_v56 = vld [vmem:[#allocation2 + $0xc0] sm:$0xf] }
  0xd0   :  { %v986_v58 = vpop.f32.mrf.mxu3 }
  0xd1   :  { %v987_v2 = vadd.f32 %v986_v58, %v817_v57  ;;  %v740_v3 = vpop.f32.mrf.mxu0  ;;  %1484 = vst [vmem:[#allocation10 + $0x110] sm:$0xff] %v1420_v62  ;;  %v1389_v6 = vmax.f32 %v1325_v1, 0.0  ;;  %v1880_v57 = vld [vmem:[#allocation2 + $0xc4] sm:$0xf0]  ;;  %v1761_v58 = vld [vmem:[#allocation2 + $0x1c0] sm:$0xf] }
  0xd2   :  { %v909_v5 = vpop.f32.mrf.mxu1  ;;  %v1635_v62 = vld [vmem:[#allocation2 + $0xc8] sm:$0xf0]  ;;  %v1911_v1 = vld [vmem:[#allocation2 + $0x1c4] sm:$0xf] }
  0xd3   :  { %v910_v7 = vadd.f32 %v909_v5, %v740_v3  ;;  %1453 = vst [vmem:[#allocation10 + $0x18] sm:$0xff] %v1389_v6  ;;  %v1291_v8 = vmul.f32 %v2142_v63, %v987_v2  ;;  %v1763_v2 = vld [vmem:[#allocation2 + $0x1c8] sm:$0xf0] }
  0xd4   :  { %779 = vmatmul.bf16.gmra.mxu0 %v1618_v59  ;;  %859 = vmatmul.bf16.gmra.mxu2 %v1746_v60  ;;  %v1912_v59 = vld [vmem:[#allocation2 + $0x1c4] sm:$0xf0] }
  0xd5   :  { %948 = vmatmul.bf16.gmra.mxu1 %v1622_v61  ;;  %1028 = vmatmul.bf16.gmra.mxu3 %v1750_v4  ;;  %v1357_v9 = vadd.f32 %v2144_v0, %v1291_v8  ;;  %v1260_v10 = vmul.f32 %v2142_v63, %v910_v7  ;;  %v1879_v61 = vld [vmem:[#allocation2 + $0xc4] sm:$0xf]  ;;  %v1634_v7 = vor.u32 %v1880_v57, %v1633_v56 }
  0xd6   :  { %v1762_v8 = vor.u32 %v1912_v59, %v1761_v58 }
  0xd7   :  { %v820_v11 = vpop.f32.mrf.mxu2  ;;  %v1421_v13 = vmax.f32 %v1357_v9, 0.0  ;;  %v1326_v14 = vadd.f32 %v2144_v0, %v1260_v10  ;;  %v1638_v9 = vor.u32 %v1879_v61, %v1635_v62 }
  0xd8   :  { %v989_v12 = vpop.f32.mrf.mxu3 }
  0xd9   :  { %v990_v15 = vadd.f32 %v989_v12, %v820_v11  ;;  %v742_v16 = vpop.f32.mrf.mxu0  ;;  %1485 = vst [vmem:[#allocation10 + $0x118] sm:$0xff] %v1421_v13  ;;  %v1390_v18 = vmax.f32 %v1326_v14, 0.0  ;;  %v1766_v14 = vor.u32 %v1911_v1, %v1763_v2 }
  0xda   :  { %v911_v17 = vpop.f32.mrf.mxu1 }
  0xdb   :  { %v912_v19 = vadd.f32 %v911_v17, %v742_v16  ;;  %1454 = vst [vmem:[#allocation10 + $0x20] sm:$0xff] %v1390_v18  ;;  %v1292_v24 = vmul.f32 %v2142_v63, %v990_v15 }
  0xdd   :  { %v1358_v29 = vadd.f32 %v2144_v0, %v1292_v24  ;;  %v1261_v30 = vmul.f32 %v2142_v63, %v912_v19 }
  0xdf   :  { %v822_v31 = vpop.f32.mrf.mxu2  ;;  %v1422_v36 = vmax.f32 %v1358_v29, 0.0  ;;  %v1327_v37 = vadd.f32 %v2144_v0, %v1261_v30  ;;  %v1641_v30 = vld [vmem:[#allocation2 + $0xd0] sm:$0xf] }
  0xe0   :  { %v991_v32 = vpop.f32.mrf.mxu3 }
  0xe1   :  { %v992_v38 = vadd.f32 %v991_v32, %v822_v31  ;;  %v745_v39 = vpop.f32.mrf.mxu0  ;;  %1486 = vst [vmem:[#allocation10 + $0x120] sm:$0xff] %v1422_v36  ;;  %v1391_v42 = vmax.f32 %v1327_v37, 0.0  ;;  %v1882_v31 = vld [vmem:[#allocation2 + $0xd4] sm:$0xf0]  ;;  %v1769_v32 = vld [vmem:[#allocation2 + $0x1d0] sm:$0xf] }
  0xe2   :  { %v914_v41 = vpop.f32.mrf.mxu1  ;;  %v1643_v36 = vld [vmem:[#allocation2 + $0xd8] sm:$0xf0]  ;;  %v1913_v37 = vld [vmem:[#allocation2 + $0x1d4] sm:$0xf] }
  0xe3   :  { %v915_v43 = vadd.f32 %v914_v41, %v745_v39  ;;  %1455 = vst [vmem:[#allocation10 + $0x28] sm:$0xff] %v1391_v42  ;;  %v1293_v44 = vmul.f32 %v2142_v63, %v992_v38  ;;  %v1771_v38 = vld [vmem:[#allocation2 + $0x1d8] sm:$0xf0] }
  0xe4   :  { %784 = vmatmul.bf16.gmra.mxu0 %v1626_v33  ;;  %864 = vmatmul.bf16.gmra.mxu2 %v1754_v34  ;;  %v1914_v33 = vld [vmem:[#allocation2 + $0x1d4] sm:$0xf0] }
  0xe5   :  { %953 = vmatmul.bf16.gmra.mxu1 %v1630_v35  ;;  %1033 = vmatmul.bf16.gmra.mxu3 %v1758_v40  ;;  %v1359_v45 = vadd.f32 %v2144_v0, %v1293_v44  ;;  %v1262_v46 = vmul.f32 %v2142_v63, %v915_v43  ;;  %v1881_v35 = vld [vmem:[#allocation2 + $0xd4] sm:$0xf]  ;;  %v1642_v43 = vor.u32 %v1882_v31, %v1641_v30 }
  0xe6   :  { %v1770_v44 = vor.u32 %v1914_v33, %v1769_v32 }
  0xe7   :  { %v825_v47 = vpop.f32.mrf.mxu2  ;;  %v1423_v49 = vmax.f32 %v1359_v45, 0.0  ;;  %v1328_v50 = vadd.f32 %v2144_v0, %v1262_v46  ;;  %v1646_v45 = vor.u32 %v1881_v35, %v1643_v36 }
  0xe8   :  { %v994_v48 = vpop.f32.mrf.mxu3 }
  0xe9   :  { %v995_v51 = vadd.f32 %v994_v48, %v825_v47  ;;  %v747_v52 = vpop.f32.mrf.mxu0  ;;  %1487 = vst [vmem:[#allocation10 + $0x128] sm:$0xff] %v1423_v49  ;;  %v1392_v54 = vmax.f32 %v1328_v50, 0.0  ;;  %v1774_v50 = vor.u32 %v1913_v37, %v1771_v38 }
  0xea   :  { %v916_v53 = vpop.f32.mrf.mxu1 }
  0xeb   :  { %v917_v55 = vadd.f32 %v916_v53, %v747_v52  ;;  %1456 = vst [vmem:[#allocation10 + $0x30] sm:$0xff] %v1392_v54  ;;  %v1294_v60 = vmul.f32 %v2142_v63, %v995_v51 }
  0xed   :  { %v1360_v3 = vadd.f32 %v2144_v0, %v1294_v60  ;;  %v1263_v4 = vmul.f32 %v2142_v63, %v917_v55 }
  0xef   :  { %v827_v5 = vpop.f32.mrf.mxu2  ;;  %v1424_v10 = vmax.f32 %v1360_v3, 0.0  ;;  %v1329_v11 = vadd.f32 %v2144_v0, %v1263_v4  ;;  %v1649_v4 = vld [vmem:[#allocation2 + $0xe0] sm:$0xf] }
  0xf0   :  { %v996_v6 = vpop.f32.mrf.mxu3 }
  0xf1   :  { %v997_v12 = vadd.f32 %v996_v6, %v827_v5  ;;  %v750_v13 = vpop.f32.mrf.mxu0  ;;  %1488 = vst [vmem:[#allocation10 + $0x130] sm:$0xff] %v1424_v10  ;;  %v1393_v16 = vmax.f32 %v1329_v11, 0.0  ;;  %v1884_v5 = vld [vmem:[#allocation2 + $0xe4] sm:$0xf0]  ;;  %v1777_v6 = vld [vmem:[#allocation2 + $0x1e0] sm:$0xf] }
  0xf2   :  { %v919_v15 = vpop.f32.mrf.mxu1  ;;  %v1651_v10 = vld [vmem:[#allocation2 + $0xe8] sm:$0xf0]  ;;  %v1915_v11 = vld [vmem:[#allocation2 + $0x1e4] sm:$0xf] }
  0xf3   :  { %v920_v17 = vadd.f32 %v919_v15, %v750_v13  ;;  %1457 = vst [vmem:[#allocation10 + $0x38] sm:$0xff] %v1393_v16  ;;  %v1295_v18 = vmul.f32 %v2142_v63, %v997_v12  ;;  %v1779_v12 = vld [vmem:[#allocation2 + $0x1e8] sm:$0xf0] }
  0xf4   :  { %789 = vmatmul.bf16.gmra.mxu0 %v1634_v7  ;;  %869 = vmatmul.bf16.gmra.mxu2 %v1762_v8  ;;  %v1916_v7 = vld [vmem:[#allocation2 + $0x1e4] sm:$0xf0] }
  0xf5   :  { %958 = vmatmul.bf16.gmra.mxu1 %v1638_v9  ;;  %1038 = vmatmul.bf16.gmra.mxu3 %v1766_v14  ;;  %v1361_v19 = vadd.f32 %v2144_v0, %v1295_v18  ;;  %v1264_v20 = vmul.f32 %v2142_v63, %v920_v17  ;;  %v1883_v9 = vld [vmem:[#allocation2 + $0xe4] sm:$0xf]  ;;  %v1650_v17 = vor.u32 %v1884_v5, %v1649_v4 }
  0xf6   :  { %v1778_v18 = vor.u32 %v1916_v7, %v1777_v6 }
  0xf7   :  { %v830_v21 = vpop.f32.mrf.mxu2  ;;  %v1425_v23 = vmax.f32 %v1361_v19, 0.0  ;;  %v1330_v24 = vadd.f32 %v2144_v0, %v1264_v20  ;;  %v1654_v19 = vor.u32 %v1883_v9, %v1651_v10 }
  0xf8   :  { %v999_v22 = vpop.f32.mrf.mxu3 }
  0xf9   :  { %v1000_v25 = vadd.f32 %v999_v22, %v830_v21  ;;  %v752_v26 = vpop.f32.mrf.mxu0  ;;  %1489 = vst [vmem:[#allocation10 + $0x138] sm:$0xff] %v1425_v23  ;;  %v1394_v28 = vmax.f32 %v1330_v24, 0.0  ;;  %v1782_v24 = vor.u32 %v1915_v11, %v1779_v12 }
  0xfa   :  { %v921_v27 = vpop.f32.mrf.mxu1 }
  0xfb   :  { %v922_v29 = vadd.f32 %v921_v27, %v752_v26  ;;  %1458 = vst [vmem:[#allocation10 + $0x40] sm:$0xff] %v1394_v28  ;;  %v1296_v34 = vmul.f32 %v2142_v63, %v1000_v25 }
  0xfd   :  { %v1362_v39 = vadd.f32 %v2144_v0, %v1296_v34  ;;  %v1265_v40 = vmul.f32 %v2142_v63, %v922_v29 }
  0xff   :  { %v832_v41 = vpop.f32.mrf.mxu2  ;;  %v1426_v46 = vmax.f32 %v1362_v39, 0.0  ;;  %v1331_v47 = vadd.f32 %v2144_v0, %v1265_v40  ;;  %v1657_v40 = vld [vmem:[#allocation2 + $0xf0] sm:$0xf] }
 0x100   :  { %v1001_v42 = vpop.f32.mrf.mxu3 }
 0x101   :  { %v1002_v48 = vadd.f32 %v1001_v42, %v832_v41  ;;  %v755_v49 = vpop.f32.mrf.mxu0  ;;  %1490 = vst [vmem:[#allocation10 + $0x140] sm:$0xff] %v1426_v46  ;;  %v1395_v52 = vmax.f32 %v1331_v47, 0.0  ;;  %v1886_v41 = vld [vmem:[#allocation2 + $0xf4] sm:$0xf0]  ;;  %v1785_v42 = vld [vmem:[#allocation2 + $0x1f0] sm:$0xf] }
 0x102   :  { %v924_v51 = vpop.f32.mrf.mxu1  ;;  %v1659_v46 = vld [vmem:[#allocation2 + $0xf8] sm:$0xf0]  ;;  %v1917_v47 = vld [vmem:[#allocation2 + $0x1f4] sm:$0xf] }
 0x103   :  { %v925_v53 = vadd.f32 %v924_v51, %v755_v49  ;;  %1459 = vst [vmem:[#allocation10 + $0x48] sm:$0xff] %v1395_v52  ;;  %v1297_v54 = vmul.f32 %v2142_v63, %v1002_v48  ;;  %v1787_v48 = vld [vmem:[#allocation2 + $0x1f8] sm:$0xf0] }
 0x104   :  { %794 = vmatmul.bf16.gmra.mxu0 %v1642_v43  ;;  %874 = vmatmul.bf16.gmra.mxu2 %v1770_v44  ;;  %v1918_v43 = vld [vmem:[#allocation2 + $0x1f4] sm:$0xf0] }
 0x105   :  { %963 = vmatmul.bf16.gmra.mxu1 %v1646_v45  ;;  %1043 = vmatmul.bf16.gmra.mxu3 %v1774_v50  ;;  %v1363_v55 = vadd.f32 %v2144_v0, %v1297_v54  ;;  %v1266_v56 = vmul.f32 %v2142_v63, %v925_v53  ;;  %v1885_v45 = vld [vmem:[#allocation2 + $0xf4] sm:$0xf]  ;;  %v1658_v53 = vor.u32 %v1886_v41, %v1657_v40 }
 0x106   :  { %v1786_v54 = vor.u32 %v1918_v43, %v1785_v42 }
 0x107   :  { %v835_v57 = vpop.f32.mrf.mxu2  ;;  %v1427_v59 = vmax.f32 %v1363_v55, 0.0  ;;  %v1332_v60 = vadd.f32 %v2144_v0, %v1266_v56  ;;  %v1662_v55 = vor.u32 %v1885_v45, %v1659_v46 }
 0x108   :  { %v1004_v58 = vpop.f32.mrf.mxu3 }
 0x109   :  { %v1005_v61 = vadd.f32 %v1004_v58, %v835_v57  ;;  %v757_v62 = vpop.f32.mrf.mxu0  ;;  %1491 = vst [vmem:[#allocation10 + $0x148] sm:$0xff] %v1427_v59  ;;  %v1396_v2 = vmax.f32 %v1332_v60, 0.0  ;;  %v1790_v60 = vor.u32 %v1917_v47, %v1787_v48 }
 0x10a   :  { %v926_v1 = vpop.f32.mrf.mxu1 }
 0x10b   :  { %v927_v3 = vadd.f32 %v926_v1, %v757_v62  ;;  %1460 = vst [vmem:[#allocation10 + $0x50] sm:$0xff] %v1396_v2  ;;  %v1298_v8 = vmul.f32 %v2142_v63, %v1005_v61 }
 0x10d   :  { %v1364_v13 = vadd.f32 %v2144_v0, %v1298_v8  ;;  %v1267_v14 = vmul.f32 %v2142_v63, %v927_v3 }
 0x10f   :  { %v837_v15 = vpop.f32.mrf.mxu2  ;;  %v1428_v20 = vmax.f32 %v1364_v13, 0.0  ;;  %v1333_v21 = vadd.f32 %v2144_v0, %v1267_v14 }
 0x110   :  { %v1006_v16 = vpop.f32.mrf.mxu3 }
 0x111   :  { %v1007_v22 = vadd.f32 %v1006_v16, %v837_v15  ;;  %v760_v23 = vpop.f32.mrf.mxu0  ;;  %1492 = vst [vmem:[#allocation10 + $0x150] sm:$0xff] %v1428_v20  ;;  %v1397_v26 = vmax.f32 %v1333_v21, 0.0 }
 0x112   :  { %v929_v25 = vpop.f32.mrf.mxu1 }
 0x113   :  { %v930_v27 = vadd.f32 %v929_v25, %v760_v23  ;;  %1461 = vst [vmem:[#allocation10 + $0x58] sm:$0xff] %v1397_v26  ;;  %v1299_v28 = vmul.f32 %v2142_v63, %v1007_v22 }
 0x114   :  { %799 = vmatmul.bf16.gmra.mxu0 %v1650_v17  ;;  %879 = vmatmul.bf16.gmra.mxu2 %v1778_v18 }
 0x115   :  { %968 = vmatmul.bf16.gmra.mxu1 %v1654_v19  ;;  %1048 = vmatmul.bf16.gmra.mxu3 %v1782_v24  ;;  %v1365_v29 = vadd.f32 %v2144_v0, %v1299_v28  ;;  %v1268_v30 = vmul.f32 %v2142_v63, %v930_v27 }
 0x117   :  { %v840_v31 = vpop.f32.mrf.mxu2  ;;  %v1429_v33 = vmax.f32 %v1365_v29, 0.0  ;;  %v1334_v34 = vadd.f32 %v2144_v0, %v1268_v30 }
 0x118   :  { %v1009_v32 = vpop.f32.mrf.mxu3 }
 0x119   :  { %v1010_v35 = vadd.f32 %v1009_v32, %v840_v31  ;;  %v762_v36 = vpop.f32.mrf.mxu0  ;;  %1493 = vst [vmem:[#allocation10 + $0x158] sm:$0xff] %v1429_v33  ;;  %v1398_v38 = vmax.f32 %v1334_v34, 0.0 }
 0x11a   :  { %v931_v37 = vpop.f32.mrf.mxu1 }
 0x11b   :  { %v932_v39 = vadd.f32 %v931_v37, %v762_v36  ;;  %1462 = vst [vmem:[#allocation10 + $0x60] sm:$0xff] %v1398_v38  ;;  %v1300_v44 = vmul.f32 %v2142_v63, %v1010_v35 }
 0x11d   :  { %v1366_v49 = vadd.f32 %v2144_v0, %v1300_v44  ;;  %v1269_v50 = vmul.f32 %v2142_v63, %v932_v39 }
 0x11f   :  { %v842_v51 = vpop.f32.mrf.mxu2  ;;  %v1430_v56 = vmax.f32 %v1366_v49, 0.0  ;;  %v1335_v57 = vadd.f32 %v2144_v0, %v1269_v50 }
 0x120   :  { %v1011_v52 = vpop.f32.mrf.mxu3 }
 0x121   :  { %v1012_v58 = vadd.f32 %v1011_v52, %v842_v51  ;;  %v765_v59 = vpop.f32.mrf.mxu0  ;;  %1494 = vst [vmem:[#allocation10 + $0x160] sm:$0xff] %v1430_v56  ;;  %v1399_v62 = vmax.f32 %v1335_v57, 0.0 }
 0x122   :  { %v934_v61 = vpop.f32.mrf.mxu1 }
 0x123   :  { %v935_v1 = vadd.f32 %v934_v61, %v765_v59  ;;  %1463 = vst [vmem:[#allocation10 + $0x68] sm:$0xff] %v1399_v62  ;;  %v1301_v2 = vmul.f32 %v2142_v63, %v1012_v58 }
 0x124   :  { %804 = vmatmul.bf16.gmra.mxu0 %v1658_v53  ;;  %884 = vmatmul.bf16.gmra.mxu2 %v1786_v54 }
 0x125   :  { %973 = vmatmul.bf16.gmra.mxu1 %v1662_v55  ;;  %1053 = vmatmul.bf16.gmra.mxu3 %v1790_v60  ;;  %v1367_v3 = vadd.f32 %v2144_v0, %v1301_v2  ;;  %v1270_v4 = vmul.f32 %v2142_v63, %v935_v1 }
 0x127   :  { %v845_v5 = vpop.f32.mrf.mxu2  ;;  %v1431_v7 = vmax.f32 %v1367_v3, 0.0  ;;  %v1336_v8 = vadd.f32 %v2144_v0, %v1270_v4 }
 0x128   :  { %v1014_v6 = vpop.f32.mrf.mxu3 }
 0x129   :  { %v1015_v9 = vadd.f32 %v1014_v6, %v845_v5  ;;  %v767_v10 = vpop.f32.mrf.mxu0  ;;  %1495 = vst [vmem:[#allocation10 + $0x168] sm:$0xff] %v1431_v7  ;;  %v1400_v12 = vmax.f32 %v1336_v8, 0.0 }
 0x12a   :  { %v936_v11 = vpop.f32.mrf.mxu1 }
 0x12b   :  { %v937_v13 = vadd.f32 %v936_v11, %v767_v10  ;;  %1464 = vst [vmem:[#allocation10 + $0x70] sm:$0xff] %v1400_v12  ;;  %v1302_v14 = vmul.f32 %v2142_v63, %v1015_v9 }
 0x12d   :  { %v1368_v15 = vadd.f32 %v2144_v0, %v1302_v14  ;;  %v1271_v16 = vmul.f32 %v2142_v63, %v937_v13 }
 0x12f   :  { %v847_v17 = vpop.f32.mrf.mxu2  ;;  %v1432_v19 = vmax.f32 %v1368_v15, 0.0  ;;  %v1337_v20 = vadd.f32 %v2144_v0, %v1271_v16 }
 0x130   :  { %v1016_v18 = vpop.f32.mrf.mxu3 }
 0x131   :  { %v1017_v21 = vadd.f32 %v1016_v18, %v847_v17  ;;  %v770_v22 = vpop.f32.mrf.mxu0  ;;  %1496 = vst [vmem:[#allocation10 + $0x170] sm:$0xff] %v1432_v19  ;;  %v1401_v24 = vmax.f32 %v1337_v20, 0.0 }
 0x132   :  { %v939_v23 = vpop.f32.mrf.mxu1 }
 0x133   :  { %v940_v25 = vadd.f32 %v939_v23, %v770_v22  ;;  %1465 = vst [vmem:[#allocation10 + $0x78] sm:$0xff] %v1401_v24  ;;  %v1303_v26 = vmul.f32 %v2142_v63, %v1017_v21 }
 0x135   :  { %v1369_v27 = vadd.f32 %v2144_v0, %v1303_v26  ;;  %v1272_v28 = vmul.f32 %v2142_v63, %v940_v25 }
 0x137   :  { %v850_v29 = vpop.f32.mrf.mxu2  ;;  %v1433_v31 = vmax.f32 %v1369_v27, 0.0  ;;  %v1338_v32 = vadd.f32 %v2144_v0, %v1272_v28 }
 0x138   :  { %v1019_v30 = vpop.f32.mrf.mxu3 }
 0x139   :  { %v1020_v33 = vadd.f32 %v1019_v30, %v850_v29  ;;  %v772_v34 = vpop.f32.mrf.mxu0  ;;  %1497 = vst [vmem:[#allocation10 + $0x178] sm:$0xff] %v1433_v31  ;;  %v1402_v36 = vmax.f32 %v1338_v32, 0.0 }
 0x13a   :  { %v941_v35 = vpop.f32.mrf.mxu1 }
 0x13b   :  { %v942_v37 = vadd.f32 %v941_v35, %v772_v34  ;;  %1466 = vst [vmem:[#allocation10 + $0x80] sm:$0xff] %v1402_v36  ;;  %v1304_v38 = vmul.f32 %v2142_v63, %v1020_v33 }
 0x13d   :  { %v1370_v39 = vadd.f32 %v2144_v0, %v1304_v38  ;;  %v1273_v40 = vmul.f32 %v2142_v63, %v942_v37 }
 0x13f   :  { %v852_v41 = vpop.f32.mrf.mxu2  ;;  %v1434_v43 = vmax.f32 %v1370_v39, 0.0  ;;  %v1339_v44 = vadd.f32 %v2144_v0, %v1273_v40 }
 0x140   :  { %v1021_v42 = vpop.f32.mrf.mxu3 }
 0x141   :  { %v1022_v45 = vadd.f32 %v1021_v42, %v852_v41  ;;  %v775_v46 = vpop.f32.mrf.mxu0  ;;  %1498 = vst [vmem:[#allocation10 + $0x180] sm:$0xff] %v1434_v43  ;;  %v1403_v48 = vmax.f32 %v1339_v44, 0.0 }
 0x142   :  { %v944_v47 = vpop.f32.mrf.mxu1 }
 0x143   :  { %v945_v49 = vadd.f32 %v944_v47, %v775_v46  ;;  %1467 = vst [vmem:[#allocation10 + $0x88] sm:$0xff] %v1403_v48  ;;  %v1305_v50 = vmul.f32 %v2142_v63, %v1022_v45 }
 0x145   :  { %v1371_v51 = vadd.f32 %v2144_v0, %v1305_v50  ;;  %v1274_v52 = vmul.f32 %v2142_v63, %v945_v49 }
 0x147   :  { %v855_v53 = vpop.f32.mrf.mxu2  ;;  %v1435_v55 = vmax.f32 %v1371_v51, 0.0  ;;  %v1340_v56 = vadd.f32 %v2144_v0, %v1274_v52 }
 0x148   :  { %v1024_v54 = vpop.f32.mrf.mxu3 }
 0x149   :  { %v1025_v57 = vadd.f32 %v1024_v54, %v855_v53  ;;  %v777_v58 = vpop.f32.mrf.mxu0  ;;  %1499 = vst [vmem:[#allocation10 + $0x188] sm:$0xff] %v1435_v55  ;;  %v1404_v60 = vmax.f32 %v1340_v56, 0.0 }
 0x14a   :  { %v946_v59 = vpop.f32.mrf.mxu1 }
 0x14b   :  { %v947_v61 = vadd.f32 %v946_v59, %v777_v58  ;;  %1468 = vst [vmem:[#allocation10 + $0x90] sm:$0xff] %v1404_v60  ;;  %v1306_v62 = vmul.f32 %v2142_v63, %v1025_v57 }
 0x14d   :  { %v1372_v1 = vadd.f32 %v2144_v0, %v1306_v62  ;;  %v1275_v2 = vmul.f32 %v2142_v63, %v947_v61 }
 0x14f   :  { %v857_v3 = vpop.f32.mrf.mxu2  ;;  %v1436_v5 = vmax.f32 %v1372_v1, 0.0  ;;  %v1341_v6 = vadd.f32 %v2144_v0, %v1275_v2 }
 0x150   :  { %v1026_v4 = vpop.f32.mrf.mxu3 }
 0x151   :  { %v1027_v7 = vadd.f32 %v1026_v4, %v857_v3  ;;  %v780_v8 = vpop.f32.mrf.mxu0  ;;  %1500 = vst [vmem:[#allocation10 + $0x190] sm:$0xff] %v1436_v5  ;;  %v1405_v10 = vmax.f32 %v1341_v6, 0.0 }
 0x152   :  { %v949_v9 = vpop.f32.mrf.mxu1 }
 0x153   :  { %v950_v11 = vadd.f32 %v949_v9, %v780_v8  ;;  %1469 = vst [vmem:[#allocation10 + $0x98] sm:$0xff] %v1405_v10  ;;  %v1307_v12 = vmul.f32 %v2142_v63, %v1027_v7  ;;  %v2244_v10 = vld [vmem:[#allocation7] ss:$0 sm:$0xff] }
 0x155   :  { %v1373_v13 = vadd.f32 %v2144_v0, %v1307_v12  ;;  %v1276_v14 = vmul.f32 %v2142_v63, %v950_v11  ;;  %v2247_v12 = vld [vmem:[#allocation8] ss:$0 sm:$0xff] }
 0x157   :  { %v860_v15 = vpop.f32.mrf.mxu2  ;;  %v1437_v17 = vmax.f32 %v1373_v13, 0.0  ;;  %v1342_v18 = vadd.f32 %v2144_v0, %v1276_v14 }
 0x158   :  { %v1029_v16 = vpop.f32.mrf.mxu3 }
 0x159   :  { %v1030_v19 = vadd.f32 %v1029_v16, %v860_v15  ;;  %v782_v20 = vpop.f32.mrf.mxu0  ;;  %1501 = vst [vmem:[#allocation10 + $0x198] sm:$0xff] %v1437_v17  ;;  %v1406_v22 = vmax.f32 %v1342_v18, 0.0 }
 0x15a   :  { %v951_v21 = vpop.f32.mrf.mxu1 }
 0x15b   :  { %v952_v23 = vadd.f32 %v951_v21, %v782_v20  ;;  %1470 = vst [vmem:[#allocation10 + $0xa0] sm:$0xff] %v1406_v22  ;;  %v1308_v24 = vmul.f32 %v2142_v63, %v1030_v19 }
 0x15d   :  { %v1374_v25 = vadd.f32 %v2144_v0, %v1308_v24  ;;  %v1277_v26 = vmul.f32 %v2142_v63, %v952_v23 }
 0x15f   :  { %v862_v27 = vpop.f32.mrf.mxu2  ;;  %v1438_v29 = vmax.f32 %v1374_v25, 0.0  ;;  %v1343_v30 = vadd.f32 %v2144_v0, %v1277_v26 }
 0x160   :  { %v1031_v28 = vpop.f32.mrf.mxu3 }
 0x161   :  { %v1032_v31 = vadd.f32 %v1031_v28, %v862_v27  ;;  %v785_v32 = vpop.f32.mrf.mxu0  ;;  %1502 = vst [vmem:[#allocation10 + $0x1a0] sm:$0xff] %v1438_v29  ;;  %v1407_v34 = vmax.f32 %v1343_v30, 0.0 }
 0x162   :  { %v954_v33 = vpop.f32.mrf.mxu1 }
 0x163   :  { %v955_v35 = vadd.f32 %v954_v33, %v785_v32  ;;  %1471 = vst [vmem:[#allocation10 + $0xa8] sm:$0xff] %v1407_v34  ;;  %v1309_v36 = vmul.f32 %v2142_v63, %v1032_v31 }
 0x165   :  { %v1375_v37 = vadd.f32 %v2144_v0, %v1309_v36  ;;  %v1278_v38 = vmul.f32 %v2142_v63, %v955_v35 }
 0x167   :  { %v865_v39 = vpop.f32.mrf.mxu2  ;;  %v1439_v41 = vmax.f32 %v1375_v37, 0.0  ;;  %v1344_v42 = vadd.f32 %v2144_v0, %v1278_v38 }
 0x168   :  { %v1034_v40 = vpop.f32.mrf.mxu3 }
 0x169   :  { %v1035_v43 = vadd.f32 %v1034_v40, %v865_v39  ;;  %v787_v44 = vpop.f32.mrf.mxu0  ;;  %1503 = vst [vmem:[#allocation10 + $0x1a8] sm:$0xff] %v1439_v41  ;;  %v1408_v46 = vmax.f32 %v1344_v42, 0.0 }
 0x16a   :  { %v956_v45 = vpop.f32.mrf.mxu1 }
 0x16b   :  { %v957_v47 = vadd.f32 %v956_v45, %v787_v44  ;;  %1472 = vst [vmem:[#allocation10 + $0xb0] sm:$0xff] %v1408_v46  ;;  %v1310_v48 = vmul.f32 %v2142_v63, %v1035_v43 }
 0x16d   :  { %v1376_v49 = vadd.f32 %v2144_v0, %v1310_v48  ;;  %v1279_v50 = vmul.f32 %v2142_v63, %v957_v47 }
 0x16f   :  { %v867_v51 = vpop.f32.mrf.mxu2  ;;  %v1440_v53 = vmax.f32 %v1376_v49, 0.0  ;;  %v1345_v54 = vadd.f32 %v2144_v0, %v1279_v50 }
 0x170   :  { %v1036_v52 = vpop.f32.mrf.mxu3 }
 0x171   :  { %v1037_v55 = vadd.f32 %v1036_v52, %v867_v51  ;;  %v790_v56 = vpop.f32.mrf.mxu0  ;;  %1504 = vst [vmem:[#allocation10 + $0x1b0] sm:$0xff] %v1440_v53  ;;  %v1409_v58 = vmax.f32 %v1345_v54, 0.0 }
 0x172   :  { %v959_v57 = vpop.f32.mrf.mxu1 }
 0x173   :  { %v960_v59 = vadd.f32 %v959_v57, %v790_v56  ;;  %1473 = vst [vmem:[#allocation10 + $0xb8] sm:$0xff] %v1409_v58  ;;  %v1311_v60 = vmul.f32 %v2142_v63, %v1037_v55 }
 0x175   :  { %v1377_v61 = vadd.f32 %v2144_v0, %v1311_v60  ;;  %v1280_v62 = vmul.f32 %v2142_v63, %v960_v59 }
 0x177   :  { %v870_v1 = vpop.f32.mrf.mxu2  ;;  %v1441_v3 = vmax.f32 %v1377_v61, 0.0  ;;  %v1346_v4 = vadd.f32 %v2144_v0, %v1280_v62 }
 0x178   :  { %v1039_v2 = vpop.f32.mrf.mxu3 }
 0x179   :  { %v1040_v5 = vadd.f32 %v1039_v2, %v870_v1  ;;  %v792_v6 = vpop.f32.mrf.mxu0  ;;  %1505 = vst [vmem:[#allocation10 + $0x1b8] sm:$0xff] %v1441_v3  ;;  %v1410_v8 = vmax.f32 %v1346_v4, 0.0 }
 0x17a   :  { %v961_v7 = vpop.f32.mrf.mxu1 }
 0x17b   :  { %v962_v9 = vadd.f32 %v961_v7, %v792_v6  ;;  %1474 = vst [vmem:[#allocation10 + $0xc0] sm:$0xff] %v1410_v8  ;;  %v1312_v11 = vmul.f32 %v2244_v10, %v1040_v5 }
 0x17d   :  { %v1378_v63 = vadd.f32 %v2247_v12, %v1312_v11  ;;  %v1281_v13 = vmul.f32 %v2244_v10, %v962_v9 }
 0x17f   :  { %v872_v14 = vpop.f32.mrf.mxu2  ;;  %v1442_v0 = vmax.f32 %v1378_v63, 0.0  ;;  %v1347_v16 = vadd.f32 %v2247_v12, %v1281_v13 }
 0x180   :  { %v1041_v15 = vpop.f32.mrf.mxu3 }
 0x181   :  { %v1042_v17 = vadd.f32 %v1041_v15, %v872_v14  ;;  %v795_v18 = vpop.f32.mrf.mxu0  ;;  %1506 = vst [vmem:[#allocation10 + $0x1c0] sm:$0xff] %v1442_v0  ;;  %v1411_v20 = vmax.f32 %v1347_v16, 0.0 }
 0x182   :  { %v964_v19 = vpop.f32.mrf.mxu1 }
 0x183   :  { %v965_v21 = vadd.f32 %v964_v19, %v795_v18  ;;  %1475 = vst [vmem:[#allocation10 + $0xc8] sm:$0xff] %v1411_v20  ;;  %v1313_v22 = vmul.f32 %v2244_v10, %v1042_v17 }
 0x185   :  { %v1379_v23 = vadd.f32 %v2247_v12, %v1313_v22  ;;  %v1282_v24 = vmul.f32 %v2244_v10, %v965_v21 }
 0x187   :  { %v875_v25 = vpop.f32.mrf.mxu2  ;;  %v1443_v27 = vmax.f32 %v1379_v23, 0.0  ;;  %v1348_v28 = vadd.f32 %v2247_v12, %v1282_v24 }
 0x188   :  { %v1044_v26 = vpop.f32.mrf.mxu3 }
 0x189   :  { %v1045_v29 = vadd.f32 %v1044_v26, %v875_v25  ;;  %v797_v30 = vpop.f32.mrf.mxu0  ;;  %1507 = vst [vmem:[#allocation10 + $0x1c8] sm:$0xff] %v1443_v27  ;;  %v1412_v32 = vmax.f32 %v1348_v28, 0.0 }
 0x18a   :  { %v966_v31 = vpop.f32.mrf.mxu1 }
 0x18b   :  { %v967_v33 = vadd.f32 %v966_v31, %v797_v30  ;;  %1476 = vst [vmem:[#allocation10 + $0xd0] sm:$0xff] %v1412_v32  ;;  %v1314_v34 = vmul.f32 %v2244_v10, %v1045_v29 }
 0x18d   :  { %v1380_v35 = vadd.f32 %v2247_v12, %v1314_v34  ;;  %v1283_v36 = vmul.f32 %v2244_v10, %v967_v33 }
 0x18f   :  { %v877_v37 = vpop.f32.mrf.mxu2  ;;  %v1444_v39 = vmax.f32 %v1380_v35, 0.0  ;;  %v1349_v40 = vadd.f32 %v2247_v12, %v1283_v36 }
 0x190   :  { %v1046_v38 = vpop.f32.mrf.mxu3 }
 0x191   :  { %v1047_v41 = vadd.f32 %v1046_v38, %v877_v37  ;;  %v800_v42 = vpop.f32.mrf.mxu0  ;;  %1508 = vst [vmem:[#allocation10 + $0x1d0] sm:$0xff] %v1444_v39  ;;  %v1413_v44 = vmax.f32 %v1349_v40, 0.0 }
 0x192   :  { %v969_v43 = vpop.f32.mrf.mxu1 }
 0x193   :  { %v970_v45 = vadd.f32 %v969_v43, %v800_v42  ;;  %1477 = vst [vmem:[#allocation10 + $0xd8] sm:$0xff] %v1413_v44  ;;  %v1315_v46 = vmul.f32 %v2244_v10, %v1047_v41 }
 0x195   :  { %v1381_v47 = vadd.f32 %v2247_v12, %v1315_v46  ;;  %v1284_v48 = vmul.f32 %v2244_v10, %v970_v45 }
 0x197   :  { %v880_v49 = vpop.f32.mrf.mxu2  ;;  %v1445_v51 = vmax.f32 %v1381_v47, 0.0  ;;  %v1350_v52 = vadd.f32 %v2247_v12, %v1284_v48 }
 0x198   :  { %v1049_v50 = vpop.f32.mrf.mxu3 }
 0x199   :  { %v1050_v53 = vadd.f32 %v1049_v50, %v880_v49  ;;  %v802_v54 = vpop.f32.mrf.mxu0  ;;  %1509 = vst [vmem:[#allocation10 + $0x1d8] sm:$0xff] %v1445_v51  ;;  %v1414_v56 = vmax.f32 %v1350_v52, 0.0 }
 0x19a   :  { %v971_v55 = vpop.f32.mrf.mxu1 }
 0x19b   :  { %v972_v57 = vadd.f32 %v971_v55, %v802_v54  ;;  %1478 = vst [vmem:[#allocation10 + $0xe0] sm:$0xff] %v1414_v56  ;;  %v1316_v58 = vmul.f32 %v2244_v10, %v1050_v53 }
 0x19d   :  { %v1382_v59 = vadd.f32 %v2247_v12, %v1316_v58  ;;  %v1285_v60 = vmul.f32 %v2244_v10, %v972_v57 }
 0x19f   :  { %v882_v61 = vpop.f32.mrf.mxu2  ;;  %v1446_v1 = vmax.f32 %v1382_v59, 0.0  ;;  %v1351_v2 = vadd.f32 %v2247_v12, %v1285_v60 }
 0x1a0   :  { %v1051_v62 = vpop.f32.mrf.mxu3 }
 0x1a1   :  { %v1052_v3 = vadd.f32 %v1051_v62, %v882_v61  ;;  %v805_v4 = vpop.f32.mrf.mxu0  ;;  %1510 = vst [vmem:[#allocation10 + $0x1e0] sm:$0xff] %v1446_v1  ;;  %v1415_v6 = vmax.f32 %v1351_v2, 0.0 }
 0x1a2   :  { %v974_v5 = vpop.f32.mrf.mxu1 }
 0x1a3   :  { %v975_v7 = vadd.f32 %v974_v5, %v805_v4  ;;  %1479 = vst [vmem:[#allocation10 + $0xe8] sm:$0xff] %v1415_v6  ;;  %v1317_v8 = vmul.f32 %v2244_v10, %v1052_v3 }
 0x1a5   :  { %v1383_v9 = vadd.f32 %v2247_v12, %v1317_v8  ;;  %v1286_v11 = vmul.f32 %v2244_v10, %v975_v7 }
 0x1a7   :  { %v885_v63 = vpop.f32.mrf.mxu2  ;;  %v1447_v14 = vmax.f32 %v1383_v9, 0.0  ;;  %v1352_v15 = vadd.f32 %v2247_v12, %v1286_v11 }
 0x1a8   :  { %v1054_v13 = vpop.f32.mrf.mxu3 }
 0x1a9   :  { %v1055_v0 = vadd.f32 %v1054_v13, %v885_v63  ;;  %v807_v16 = vpop.f32.mrf.mxu0  ;;  %1511 = vst [vmem:[#allocation10 + $0x1e8] sm:$0xff] %v1447_v14  ;;  %v1416_v18 = vmax.f32 %v1352_v15, 0.0 }
 0x1aa   :  { %v976_v17 = vpop.f32.mrf.mxu1 }
 0x1ab   :  { %v977_v19 = vadd.f32 %v976_v17, %v807_v16  ;;  %1480 = vst [vmem:[#allocation10 + $0xf0] sm:$0xff] %v1416_v18  ;;  %v1318_v20 = vmul.f32 %v2244_v10, %v1055_v0 }
 0x1ad   :  { %v1384_v21 = vadd.f32 %v2247_v12, %v1318_v20  ;;  %v1287_v22 = vmul.f32 %v2244_v10, %v977_v19 }
 0x1af   :  { %v887_v23 = vpop.f32.mrf.mxu2  ;;  %v1448_v25 = vmax.f32 %v1384_v21, 0.0  ;;  %v1353_v26 = vadd.f32 %v2247_v12, %v1287_v22 }
 0x1b0   :  { %v1056_v24 = vpop.f32.mrf.mxu3 }
 0x1b1   :  { %v1057_v27 = vadd.f32 %v1056_v24, %v887_v23  ;;  %1512 = vst [vmem:[#allocation10 + $0x1f0] sm:$0xff] %v1448_v25  ;;  %v1417_v28 = vmax.f32 %v1353_v26, 0.0 }
 0x1b3   :  { %1481 = vst [vmem:[#allocation10 + $0xf8] sm:$0xff] %v1417_v28  ;;  %v1319_v29 = vmul.f32 %v2244_v10, %v1057_v27 }
 0x1b5   :  { %v1385_v30 = vadd.f32 %v2247_v12, %v1319_v29 }
 0x1b7   :  { %v1449_v31 = vmax.f32 %v1385_v30, 0.0 }
 0x1b9   :  { %1513 = vst [vmem:[#allocation10 + $0x1f8] sm:$0xff] %v1449_v31 }
 0x1ba   :  { %1526 = dma.vmem_to_hbm [thread:$0]  %s1519_s3, 8192, %s1521_s13, [#allocation4], %s2097_s27, %s2097_s27, %s2098_s28  }
 0x1bb   :  { %2091 = dma.done.wait [#allocation4], 8192  }
 0x1bc   :  { %2092 = vsyncadd [#allocation4], 4294959104 }
 0x1bd   :  { %1531 = vsyncpa [#allocation3], 1 }
 0x1be   :  { %1532 = vsyncpa [#allocation6], 1 }
 0x1bf   :  { %1533 = vsyncpa [#allocation9], 1 }
 0x1c0   :  { %1534 = vsyncpa [#allocation4], 1 }

</bundles_post_ra>
